<compile_context>
chip_gen: v6e
topology: v6e:2x2x1
jax: 0.10.0
libtpu: 0.0.40
codegen_flags: <defaults>
</compile_context>

<pallas_src>
import functools
import numpy as np
import jax
import jax.numpy as jnp
from jax.experimental import pallas as pl
from jax.experimental.pallas import tpu as pltpu

# ---- static module config: RescaleTransform(inshape=(16,16), factor=0.5,
# ----                                         gaussian_filter_flag=True) ----
INSHAPE = (16, 16)
NDIMS = 2                      # channels == ndims for a 2-D vector field
FACTOR = (0.5, 0.5)            # factor < 1  ->  gaussian smooth + downsample + rescale
GAUSSIAN_FILTER_FLAG = True
# TODO(synk): only the 2-D, factor<1, gaussian_filter_flag=True branch is implemented
#             (the factor>1 branch and the 3-D conv3d/trilinear path are not exercised here).


# --------------------------------------------------------------------------------------
# host-side constant construction (numpy only, executed ONCE via lru_cache)
# --------------------------------------------------------------------------------------
def _gaussian_1d(sigma):
    """1-D normalized gaussian taps; exact separable factor of the module's 2-D kernel."""
    ks = int(np.ceil(sigma * 3) + np.mod(np.ceil(sigma * 3) + 1, 2))
    coord = np.arange(ks, dtype=np.float64)
    mean = (ks - 1) / 2.0
    var = sigma ** 2.0
    g = np.exp(-((coord - mean) ** 2.0) / (2.0 * var))
    return g / g.sum(), ks


def _gaussian_kernel_2d(kernel_sigma):
    """Identical math to RescaleTransform.gaussian_filter_2d (used only by the numpy reference)."""
    kernel_size = [int(np.ceil(ks * 3) + np.mod(np.ceil(ks * 3) + 1, 2)) for ks in kernel_sigma]
    coord = [np.arange(ks) for ks in kernel_size]
    YY, XX = np.meshgrid(coord[0], coord[1], indexing='ij')
    xy_grid = np.concatenate((YY[np.newaxis], XX[np.newaxis]), axis=0)
    mean = np.asarray([(ks - 1) / 2.0 for ks in kernel_size]).reshape(-1, 1, 1)
    variance = np.asarray([ks ** 2.0 for ks in kernel_sigma]).reshape(-1, 1, 1)
    norm_kernel = 1.0 / (np.sqrt(2 * np.pi) ** 2 + np.prod(kernel_sigma))
    kernel = norm_kernel * np.exp(-np.sum((xy_grid - mean) ** 2.0 / (2 * variance), axis=0))
    kernel = kernel / np.sum(kernel)
    kernel = kernel.reshape(1, 1, kernel_size[0], kernel_size[1])
    total = np.zeros((2, 2) + tuple(kernel_size), dtype=np.float64)
    total[0, 0] = kernel
    total[1, 1] = kernel
    return total.astype(np.float32)


def _interp_matrix(in_size, out_size):
    """F.interpolate(mode='bilinear', align_corners=True) along one axis as a dense
    (out_size, in_size) weight matrix."""
    W = np.zeros((out_size, in_size), dtype=np.float64)
    for p in range(out_size):
        src = p * (in_size - 1) / (out_size - 1) if out_size > 1 else 0.0
        i0 = int(np.floor(src))
        i1 = min(i0 + 1, in_size - 1)
        w = src - i0
        W[p, i0] += (1.0 - w)
        W[p, i1] += w
    return W


@functools.lru_cache(maxsize=None)
def _fused_block_matrix():
    """Fold gaussian conv ('same' zero pad) + bilinear resize + channel factor into one
    per-channel matrix Mblk of shape (H*W, OH*OW).  Exact: all three ops are linear,
    the gaussian is separable and channel-diagonal, and the scalar factor commutes.
    Built once; returned as a device constant (jnp array)."""
    H, W = INSHAPE
    kernel_sigma = [0.44 * 1.0 / f for f in FACTOR]
    gh, KH = _gaussian_1d(kernel_sigma[0])
    gw, KW = _gaussian_1d(kernel_sigma[1])
    pad_h, pad_w = (KH - 1) // 2, (KW - 1) // 2
    OH = int(np.floor(H * FACTOR[0]))
    OW = int(np.floor(W * FACTOR[1]))

    # 1-D zero-padded 'same' cross-correlation as dense matrices (boundary handled exactly).
    Gh = np.zeros((H, H), np.float64)                 # rows:   conv = Gh @ X
    for i in range(H):
        for kh in range(KH):
            j = i + kh - pad_h
            if 0 <= j < H:
                Gh[i, j] += gh[kh]
    GwT = np.zeros((W, W), np.float64)                # cols:   conv = X @ GwT
    for j in range(W):
        for kw in range(KW):
            m = j + kw - pad_w
            if 0 <= m < W:
                GwT[m, j] += gw[kw]

    Wh = _interp_matrix(H, OH)                        # (OH, H)
    Ww = _interp_matrix(W, OW).T                      # (W, OW)
    A = Wh @ Gh                                       # (OH, H)   conv+interp along rows
    B = GwT @ Ww                                      # (W, OW)   conv+interp along cols

    # Per-channel map:  out[p, q] = sum_{h,w} A[p,h] * x[h,w] * B[w,q]
    Mblk = np.einsum('ph,wq->hwpq', A, B).reshape(H * W, OH * OW)

    # The per-channel factor is identical across channels in this config, so it folds
    # straight into the single shared block (keeps the channel-block-diagonal structure
    # implicit -> x can be viewed as (N*C, H*W) and hit the same matrix).
    assert len(set(FACTOR)) == 1, "per-channel factors must match to fold into one block"
    Mblk = Mblk * FACTOR[0]
    # TODO(synk): if per-channel factors ever differ, apply a per-row scale to the output
    #             (or build one block per channel) instead of folding a single scalar.
    return jnp.asarray(Mblk.astype(np.float32)), (OH, OW)


# --------------------------------------------------------------------------------------
# Pallas kernel: one MXU matmul, grid-less, everything resident in VMEM
# --------------------------------------------------------------------------------------
def _rescale_kernel(x_ref, m_ref, o_ref):
    # x: (N*C, H*W) = (4, 256)   m: (H*W, OH*OW) = (256, 64)   o: (N*C, OH*OW) = (4, 64)
    o_ref[...] = jnp.dot(x_ref[...], m_ref[...],
                         preferred_element_type=jnp.float32).astype(o_ref.dtype)


@jax.jit
def _rescale_jit(x):
    N, C, H, W = x.shape
    m, (OH, OW) = _fused_block_matrix()               # baked-in constant under jit
    x2 = x.astype(jnp.float32).reshape(N * C, H * W)  # free row-major reshape

    flops = 2 * (N * C) * (H * W) * (OH * OW)
    bytes_accessed = 4 * ((N * C) * (H * W) + (H * W) * (OH * OW) + (N * C) * (OH * OW))

    # Grid-less single program: whole working set is ~65 KiB (well under VMEM on all chips).
    # No grid over N / megacore split at this size (per-step overhead would dominate).
    out2 = pl.pallas_call(
        _rescale_kernel,
        out_shape=jax.ShapeDtypeStruct((N * C, OH * OW), jnp.float32),
        in_specs=[
            pl.BlockSpec(memory_space=pltpu.MemorySpace.VMEM),   # x slab
            pl.BlockSpec(memory_space=pltpu.MemorySpace.VMEM),   # fused per-channel matrix
        ],
        out_specs=pl.BlockSpec(memory_space=pltpu.MemorySpace.VMEM),
        cost_estimate=pl.CostEstimate(flops=flops, transcendentals=0,
                                      bytes_accessed=bytes_accessed),
    )(x2, m)

    return out2.reshape(N, C, OH, OW)                 # free reshape (contiguous)


def rescale_transform(x):
    """Pallas implementation of RescaleTransform.forward for the config above."""
    assert GAUSSIAN_FILTER_FLAG and FACTOR[0] < 1
    N, C, H, W = x.shape
    assert C == NDIMS and (H, W) == INSHAPE
    return _rescale_jit(x)


# --------------------------------------------------------------------------------------
# numpy reference of the original forward semantics (unfused, for sanity checking)
# --------------------------------------------------------------------------------------
def _reference_numpy(x_np):
    H, W = INSHAPE
    kernel_sigma = [0.44 * 1.0 / f for f in FACTOR]
    K = _gaussian_kernel_2d(kernel_sigma)                  # (2,2,KH,KW), block-diagonal
    KH, KW = K.shape[2], K.shape[3]
    pad_h, pad_w = (KH - 1) // 2, (KW - 1) // 2
    OH = int(np.floor(H * FACTOR[0]))
    OW = int(np.floor(W * FACTOR[1]))
    Wh = _interp_matrix(H, OH)                             # (OH, H)
    Ww = _interp_matrix(W, OW).T                           # (W, OW)

    N, C = x_np.shape[:2]
    xpad = np.pad(x_np, ((0, 0), (0, 0), (pad_h, pad_h), (pad_w, pad_w)))
    conv = np.zeros_like(x_np)
    for n in range(N):
        for co in range(C):
            a = np.zeros((H, W), np.float64)
            for ci in range(C):
                for kh in range(KH):
                    for kw in range(KW):
                        a += K[co, ci, kh, kw] * xpad[n, ci, kh:kh + H, kw:kw + W]
            conv[n, co] = a
    out = np.einsum('ph,nchw,wq->ncpq', Wh, conv, Ww)
    for i in range(C):
        out[:, i] *= FACTOR[i]
    return out.astype(np.float32)


if __name__ == "__main__":
    key = jax.random.PRNGKey(0)
    # (batch=2, channels=ndims=2, H=16, W=16) vector field
    x = jax.random.normal(key, (2, NDIMS) + INSHAPE, dtype=jnp.float32)

    y = jax.block_until_ready(rescale_transform(x))
    assert y.shape == (2, NDIMS, 8, 8), y.shape

    ref = _reference_numpy(np.asarray(x, dtype=np.float32))
    np.testing.assert_allclose(np.asarray(y), ref, rtol=1e-4, atol=1e-4)

    print("KERNEL_OK")
</pallas_src>

<mosaic_0001>
module attributes {stable_mosaic.version = 11 : i64} {
  func.func @_rescale_kernel(%arg0: memref<4x256xf32, #tpu.memory_space<vmem>>, %arg1: memref<256x64xf32, #tpu.memory_space<vmem>>, %arg2: memref<4x64xf32, #tpu.memory_space<vmem>>) attributes {dimension_semantics = [], scalar_prefetch = 0 : i64, scratch_operands = 0 : i64, tpu.core_type = #tpu.core_type<tc>} {
    %c0 = arith.constant 0 : index
    %c0_0 = arith.constant 0 : index
    %0 = vector.load %arg0[%c0, %c0_0] : memref<4x256xf32, #tpu.memory_space<vmem>>, vector<4x256xf32>
    %c0_1 = arith.constant 0 : index
    %c0_2 = arith.constant 0 : index
    %1 = vector.load %arg1[%c0_1, %c0_2] : memref<256x64xf32, #tpu.memory_space<vmem>>, vector<256x64xf32>
    %cst = arith.constant dense<0.000000e+00> : vector<4x64xf32>
    %2 = tpu.matmul %0, %1, %cst {dimension_numbers = #tpu.dot_dimension_numbers<[1], [0], [0], [1], [0, 0, 1, 1], [], []>} : vector<4x256xf32>, vector<256x64xf32>, vector<4x64xf32> -> vector<4x64xf32>
    %c0_3 = arith.constant 0 : index
    %c0_4 = arith.constant 0 : index
    %3 = vector.load %arg2[%c0_3, %c0_4] : memref<4x64xf32, #tpu.memory_space<vmem>>, vector<4x64xf32>
    tpu.vector_store %arg2[%c0_3, %c0_4], %2 {strides = array<i32>} : memref<4x64xf32, #tpu.memory_space<vmem>>, vector<4x64xf32>,
    return
  }
}

</mosaic_0001>

<bundles_post_ra>
// kernel: _rescale_jit.1
= control target key start
LH: loop header
LB: loop body
LE: loop exit
PB: predicated region body
PF: predicated region fallthrough
CT: control target
= control target key end

     0   :  { %7 = vsyncpa [#allocation3], 0  ;;  %s199_s9 = smov [#allocation2]   ;;  %s226_s0 = inlined_call_operand.vmem [shape: f32[4,256], index: 0, kind: input, shape index: {}]   ;;  %s227_s1 = inlined_call_operand.hbm [shape: f32[256,64], index: 1, kind: input, shape index: {}]   ;;  %s228_s2 = inlined_call_operand.vmem [shape: f32[4,64], index: 2, kind: output, shape index: {}]  }
   0x1   :  { %s15_s10 = sshll.u32 %s199_s9, 4  ;;  %s16_s10 = int_to_ptr.vmem [resolvable:$true] %s15_s10 }
   0x2   :  { %s185_s11 = scalar_lea.vmem %s16_s10, 4096  ;;  %p190_p1 = scmp.lt.s32.totalorder %s16_s10, %s16_s10 }
   0x3   :  { %p186_p0 = scmp.ne.s32.totalorder %s16_s10, %s185_s11  ;;  %p191_p2 = scmp.lt.s32.totalorder %s185_s11, %s185_s11 }
   0x5   :  { %p192_p3 = por %p191_p2, %p190_p1 }
   0x7   :  { %p193_p4 = pnand %p192_p3, %p186_p0 }
   0x9   :  { %196 = shalt.err (!%p193_p4)
}
   0xa   :  { %s200_s12 = smov 128   ;;  %s201_s13 = smov 8  }
   0xb   :  { %21 = dma.hbm_to_vmem [thread:$0]  %s227_s1, 4096, %s16_s10, [#allocation3], %s200_s12, %s200_s12, %s201_s13  }
   0xc   :  { %197 = dma.done.wait [#allocation3], 4096  }
   0xd   :  { %198 = vsyncadd [#allocation3], 4294963200  ;;  %v57_v0 = vld [vmem:[#allocation2 + $0xf8] sm:$0xff]  ;;  %v56_v2 = vld [vmem:[#allocation2 + $0xf0] sm:$0xff]  ;;  %vm131_vm0 = vcmask 519168  }
   0xe   :  { %v41_v1 = vld [vmem:[#allocation2 + $0x78] sm:$0xff]  ;;  %138 = vmatprep.subr.mxu0 %v57_v0  ;;  %v40_v3 = vld [vmem:[#allocation2 + $0x70] sm:$0xff]  ;;  %v55_v4 = vld [vmem:[#allocation2 + $0xe8] sm:$0xff] }
   0xf   :  { %139 = vmatpush3.msra.mxu0 %v41_v1  ;;  %v39_v5 = vld [vmem:[#allocation2 + $0x68] sm:$0xff]  ;;  %v54_v6 = vld [vmem:[#allocation2 + $0xe0] sm:$0xff]  ;;  %v53_v8 = vld [vmem:[#allocation2 + $0xd8] sm:$0xff] }
  0x10   :  { %140 = vmatprep.subr.mxu0 %v56_v2  ;;  %v38_v7 = vld [vmem:[#allocation2 + $0x60] sm:$0xff]  ;;  %v37_v9 = vld [vmem:[#allocation2 + $0x58] sm:$0xff]  ;;  %v52_v10 = vld [vmem:[#allocation2 + $0xd0] sm:$0xff] }
  0x11   :  { %141 = vmatpush3.msra.mxu0 %v40_v3  ;;  %v36_v11 = vld [vmem:[#allocation2 + $0x50] sm:$0xff]  ;;  %v51_v12 = vld [vmem:[#allocation2 + $0xc8] sm:$0xff]  ;;  %v25_v13 = vld [vmem:[%s226_s0] sm:$0xff] }
  0x12   :  { %142 = vmatprep.subr.mxu0 %v55_v4  ;;  %v35_v14 = vld [vmem:[#allocation2 + $0x48] sm:$0xff]  ;;  %v59_v15 = vcombine.high %v25_v13, %v25_v13  ;;  %v50_v16 = vld [vmem:[#allocation2 + $0xc0] sm:$0xff]  ;;  %v49_v18 = vld [vmem:[#allocation2 + $0xb8] sm:$0xff] }
  0x13   :  { %143 = vmatpush3.msra.mxu0 %v39_v5  ;;  %v34_v17 = vld [vmem:[#allocation2 + $0x40] sm:$0xff]  ;;  %v33_v19 = vld [vmem:[#allocation2 + $0x38] sm:$0xff]  ;;  %v48_v20 = vld [vmem:[#allocation2 + $0xb0] sm:$0xff] }
  0x14   :  { %144 = vmatprep.subr.mxu0 %v54_v6  ;;  %125 = vmatprep.mubr.f32.mxu0 %v59_v15  ;;  %v32_v21 = vld [vmem:[#allocation2 + $0x30] sm:$0xff]  ;;  %v47_v22 = vld [vmem:[#allocation2 + $0xa8] sm:$0xff]  ;;  %v46_v24 = vld [vmem:[#allocation2 + $0xa0] sm:$0xff] }
  0x15   :  { %145 = vmatpush3.msra.mxu0 %v38_v7  ;;  %v31_v23 = vld [vmem:[#allocation2 + $0x28] sm:$0xff]  ;;  %v30_v25 = vld [vmem:[#allocation2 + $0x20] sm:$0xff]  ;;  %v45_v26 = vld [vmem:[#allocation2 + $0x98] sm:$0xff] }
  0x16   :  { %146 = vmatprep.subr.mxu0 %v53_v8  ;;  %v29_v27 = vld [vmem:[#allocation2 + $0x18] sm:$0xff]  ;;  %v44_v28 = vld [vmem:[#allocation2 + $0x90] sm:$0xff]  ;;  %v43_v30 = vld [vmem:[#allocation2 + $0x88] sm:$0xff] }
  0x17   :  { %147 = vmatpush3.msra.mxu0 %v37_v9  ;;  %v28_v29 = vld [vmem:[#allocation2 + $0x10] sm:$0xff]  ;;  %v27_v31 = vld [vmem:[#allocation2 + $0x8] sm:$0xff]  ;;  %v42_v32 = vld [vmem:[#allocation2 + $0x80] sm:$0xff] }
  0x18   :  { %148 = vmatprep.subr.mxu0 %v52_v10  ;;  %v26_v33 = vld [vmem:[#allocation2] sm:$0xff] }
  0x19   :  { %149 = vmatpush3.msra.mxu0 %v36_v11 }
  0x1a   :  { %150 = vmatprep.subr.mxu0 %v51_v12 }
  0x1b   :  { %151 = vmatpush3.msra.mxu0 %v35_v14 }
  0x1c   :  { %152 = vmatprep.subr.mxu0 %v50_v16 }
  0x1d   :  { %153 = vmatpush3.msra.mxu0 %v34_v17 }
  0x1e   :  { %154 = vmatprep.subr.mxu0 %v49_v18 }
  0x1f   :  { %155 = vmatpush3.msra.mxu0 %v33_v19 }
  0x20   :  { %156 = vmatprep.subr.mxu0 %v48_v20 }
  0x21   :  { %157 = vmatpush3.msra.mxu0 %v32_v21 }
  0x22   :  { %158 = vmatprep.subr.mxu0 %v47_v22 }
  0x23   :  { %159 = vmatpush3.msra.mxu0 %v31_v23 }
  0x24   :  { %160 = vmatprep.subr.mxu0 %v46_v24 }
  0x25   :  { %161 = vmatpush3.msra.mxu0 %v30_v25 }
  0x26   :  { %162 = vmatprep.subr.mxu0 %v45_v26 }
  0x27   :  { %163 = vmatpush3.msra.mxu0 %v29_v27 }
  0x28   :  { %164 = vmatprep.subr.mxu0 %v44_v28 }
  0x29   :  { %165 = vmatpush3.msra.mxu0 %v28_v29 }
  0x2a   :  { %166 = vmatprep.subr.mxu0 %v43_v30 }
  0x2b   :  { %167 = vmatpush3.msra.mxu0 %v27_v31 }
  0x2c   :  { %168 = vmatprep.subr.mxu0 %v42_v32 }
  0x2d   :  { %169 = vmatpush3.msra.mxu0 %v26_v33 }
  0x2e   :  { %126 = vmatmul.mubr.f32.vlgmr.msra.gmra.mxu0 %v25_v13 }
  0xee   :  { %v170_v34 = vpop.f32.mrf.mxu0 }
  0xf0   :  { %v171_v35 = vpop.f32.mrf.mxu0 }
  0xf1   :  { %v172_v36 = vadd.f32 %v171_v35, %v170_v34 }
  0xf3   :  { %132 = vst.msk [vmem:[%s228_s2] sm:$0xf] %vm131_vm0, %v172_v36 }
  0xf4   :  { %137 = vsyncpa [#allocation3], 1 }

</bundles_post_ra>
